<compile_context>
chip_gen: v7x
topology: tpu7x:2x2x1
jax: 0.10.0
libtpu: 0.0.40
codegen_flags: <defaults>
</compile_context>

<pallas_src>
import functools

import jax
import jax.numpy as jnp
from jax.experimental import pallas as pl
from jax.experimental.pallas import tpu as pltpu

_MIB = 1024 * 1024


def _round_up(v, m):
    return ((v + m - 1) // m) * m


def _vmem_capacity_bytes():
    """Physical VMEM of the attached TPU; conservative (v7x-sized) fallback."""
    get_info = getattr(pltpu, "get_tpu_info", None)
    if get_info is not None:
        try:
            cap = int(get_info().vmem_capacity_bytes)
            if cap > 0:
                return cap
        except Exception:
            pass
    return 64 * _MIB


@functools.lru_cache(maxsize=None)
def _single_buffered_weights_supported():
    """One-time probe: does this jax build lower pipeline_mode=pl.Buffered(1)?

    Runs a tiny throwaway pallas_call through lower().compile() once; the real
    kernel is never wrapped in a broad try/except.
    """
    if not hasattr(pl, "Buffered"):
        return False
    try:
        spec = pl.BlockSpec((8, 128), lambda i: (0, 0), pipeline_mode=pl.Buffered(1))
    except TypeError:
        return False

    def _probe_kernel(x_ref, o_ref):
        o_ref[...] = x_ref[...] + 1.0

    try:
        probe = pl.pallas_call(
            _probe_kernel,
            out_shape=jax.ShapeDtypeStruct((8, 128), jnp.float32),
            grid=(1,),
            in_specs=[spec],
            out_specs=pl.BlockSpec((8, 128), lambda i: (0, 0)),
        )
        jax.jit(probe).lower(jnp.zeros((8, 128), jnp.float32)).compile()
        return True
    except Exception:
        return False


def _make_soft_attn_kernel(inv_len):
    """inv_len = 1 / (true, unpadded L); baked in as a static constant."""

    def soft_attn_kernel(x_ref, w1t_ref, w2t_ref, b2_ref, wc_ref, o_ref):
        tb, L, D = x_ref.shape
        mm_dtype = w1t_ref.dtype          # bf16 on the perf path, f32 otherwise

        x = x_ref[...]                    # (TB, L, D), streamed in mm_dtype
        x_f32 = x.astype(jnp.float32)

        # torch.mean(x, dim=1) over the TRUE sequence length (padded rows are 0).
        mean = jnp.sum(x_f32, axis=1) * inv_len                          # (TB, D) f32

        # weight1(mean) with weight2's bias folded in: one (TB, D) add instead of
        # a (TB, L, D) broadcast-add later.
        h1 = jnp.dot(mean.astype(mm_dtype), w1t_ref[...],
                     preferred_element_type=jnp.float32) + b2_ref[...]   # (TB, D)

        # weight2(x): flatten (TB, L) -> TB*L so the MXU sees one big matmul.
        # TB and L are multiples of 8, D a multiple of 128 -> layout-preserving.
        x2d = x.reshape(tb * L, D)        # already in mm_dtype, no cast
        h2 = jnp.dot(x2d, w2t_ref[...],
                     preferred_element_type=jnp.float32).reshape(tb, L, D)

        # sigmoid in f32 (EUP); h1 broadcasts over the sequence dim.
        attn = jax.nn.sigmoid(h1[:, None, :] + h2)                       # (TB, L, D)

        # weight_c(attn): (.., D) @ (D, 1) is MXU-degenerate -> VPU mul + lane reduce.
        # Padded D lanes of wc are zero, so they contribute nothing.
        a = jnp.sum(attn * wc_ref[...][None, :, :], axis=-1, keepdims=True)  # (TB, L, 1)

        # out = attn^T @ x per batch: also degenerate -> VPU mul + sublane reduce.
        # Padded L rows of x are zero, so they contribute nothing.
        o_ref[...] = jnp.sum(a * x_f32, axis=1).astype(o_ref.dtype)      # (TB, D)

    return soft_attn_kernel


def _soft_attn_pallas(x_pad, w1t, w2t, b2_row, wc_row, *, tb, inv_len, out_dtype,
                      single_buffer_weights, vmem_limit):
    b_pad, L, D = x_pad.shape
    grid = (b_pad // tb,)

    def const_spec(shape):
        idx = lambda i: (0,) * len(shape)
        if single_buffer_weights:
            # Block index never changes across the grid -> one VMEM buffer suffices.
            return pl.BlockSpec(shape, idx, pipeline_mode=pl.Buffered(1))
        return pl.BlockSpec(shape, idx)

    itemsize_x = x_pad.dtype.itemsize
    itemsize_w = w1t.dtype.itemsize

    # Advisory cost estimate so XLA schedules the surrounding graph sensibly.
    cost = pl.CostEstimate(
        flops=2 * b_pad * L * D * D + 2 * b_pad * D * D + 6 * b_pad * L * D,
        transcendentals=2 * b_pad * L * D,            # sigmoid ~ exp + reciprocal
        bytes_accessed=(x_pad.size * itemsize_x + 2 * D * D * itemsize_w
                        + 2 * D * 4 + b_pad * D * jnp.dtype(out_dtype).itemsize),
    )

    return pl.pallas_call(
        _make_soft_attn_kernel(inv_len),
        out_shape=jax.ShapeDtypeStruct((b_pad, D), out_dtype),
        grid_spec=pltpu.PrefetchScalarGridSpec(
            num_scalar_prefetch=0,
            grid=grid,
            in_specs=[
                pl.BlockSpec((tb, L, D), lambda i: (i, 0, 0)),   # x: TB batch rows
                const_spec((D, D)),                              # W1^T
                const_spec((D, D)),                              # W2^T
                const_spec((1, D)),                              # b2 row (f32)
                const_spec((1, D)),                              # wc row (f32)
            ],
            out_specs=pl.BlockSpec((tb, D), lambda i: (i, 0)),
        ),
        compiler_params=pltpu.CompilerParams(
            dimension_semantics=("parallel",),   # shard batch grid over v7x's 2 TCs
            vmem_limit_bytes=vmem_limit,
        ),
        cost_estimate=cost,
    )(x_pad, w1t, w2t, b2_row, wc_row)


def soft_attn_forward(x, w1, w2, b2, wc, *, matmul_dtype=jnp.bfloat16):
    """x: (B, L, D); w1, w2: (D, D); b2: (D,); wc: (1, D)  (PyTorch nn.Linear layouts).

    Returns (B, D), matching soft_attn(dim=D).forward(x). x and the MXU operands
    are streamed in `matmul_dtype` (bf16 by default); mean / sigmoid / reductions
    stay in f32 inside the kernel.
    """
    B, L, D = x.shape
    out_dtype = x.dtype

    # Lane-dense / sublane-aligned padding:
    #   D -> multiple of 128 (full lane occupancy, unmasked stores),
    #   L -> multiple of 8  (layout-preserving reshape; padded rows are zero and
    #                        the in-kernel mean divides by the true L).
    D_pad = _round_up(max(D, 128), 128)
    L_pad = _round_up(max(L, 8), 8)

    # One-time parameter prep OUTSIDE the kernel: transpose, cast, zero-pad.
    w1t = jnp.asarray(w1, jnp.float32).T.astype(matmul_dtype)    # (D, D) = W1^T
    w2t = jnp.asarray(w2, jnp.float32).T.astype(matmul_dtype)    # (D, D) = W2^T
    b2_row = jnp.asarray(b2, jnp.float32).reshape(1, D)
    wc_row = jnp.asarray(wc, jnp.float32).reshape(1, D)
    if D_pad != D:
        w1t = jnp.pad(w1t, ((0, D_pad - D), (0, D_pad - D)))
        w2t = jnp.pad(w2t, ((0, D_pad - D), (0, D_pad - D)))
        b2_row = jnp.pad(b2_row, ((0, 0), (0, D_pad - D)))
        wc_row = jnp.pad(wc_row, ((0, 0), (0, D_pad - D)))        # zero wc lanes

    # Stream x in the matmul dtype (bf16 default): halves HBM traffic on the only
    # large array; no in-kernel cast before the W2 matmul.
    x_stream = jnp.asarray(x, matmul_dtype)
    if D_pad != D or L_pad != L:
        x_stream = jnp.pad(x_stream, ((0, 0), (0, L_pad - L), (0, D_pad - D)))

    itemsize_x = jnp.dtype(matmul_dtype).itemsize
    itemsize_w = jnp.dtype(matmul_dtype).itemsize

    # Per-generation VMEM budget (v5e/v6e: 128 MiB physical, v7x: 64 MiB).
    vmem_cap = _vmem_capacity_bytes()
    vmem_budget = min(int(0.75 * vmem_cap), 100 * _MIB)

    single_buffer = _single_buffered_weights_supported()
    weight_bufs = 1 if single_buffer else 2
    const_vmem = weight_bufs * (2 * D_pad * D_pad * itemsize_w + 2 * D_pad * 4)

    # Adaptive TB (multiple of 8): x block >= ~2 MiB, fits the VMEM budget, and
    # never pads the batch beyond one block's worth.
    per_b_x = L_pad * D_pad * itemsize_x
    per_b_f32 = L_pad * D_pad * 4
    per_b_vmem = 2 * per_b_x + 4 * per_b_f32 + 4 * D_pad * 4
    tb_target = _round_up(max(1, (2 * _MIB) // per_b_x), 8)
    tb_vmem_max = max(8, ((max(vmem_budget - const_vmem, per_b_vmem)
                           // per_b_vmem) // 8) * 8)
    tb = max(8, min(tb_target, tb_vmem_max, _round_up(B, 8)))

    # Pad batch so every output block is a full (TB, D_pad) tile; padded rows
    # compute harmless values that are sliced off below.
    b_pad = _round_up(B, tb)
    if b_pad != B:
        x_stream = jnp.pad(x_stream, ((0, b_pad - B), (0, 0), (0, 0)))

    vmem_need = const_vmem + tb * per_b_vmem
    vmem_limit = int(min(max(2 * vmem_need, 16 * _MIB), vmem_budget))

    out = _soft_attn_pallas(
        x_stream, w1t, w2t, b2_row, wc_row,
        tb=tb, inv_len=1.0 / float(L), out_dtype=out_dtype,
        single_buffer_weights=single_buffer, vmem_limit=vmem_limit)
    return out[:B, :D]


def reference_forward(x, w1, w2, b2, wc):
    """Pure-JAX mirror of the PyTorch soft_attn module (all f32)."""
    mean = jnp.mean(x, axis=1, keepdims=True)                        # (B, 1, D)
    attn = (jnp.einsum("bld,ed->ble", jnp.broadcast_to(mean, x.shape), w1)
            + jnp.einsum("bld,ed->ble", x, w2) + b2[None, None, :])
    attn = jax.nn.sigmoid(attn)
    a = jnp.einsum("bld,od->blo", attn, wc)                          # (B, L, 1)
    out = jnp.einsum("bol,bld->bod", jnp.swapaxes(a, 1, 2), x)       # (B, 1, D)
    return out[:, 0, :]


if __name__ == "__main__":
    B, L, D = 2, 8, 32
    key = jax.random.PRNGKey(0)
    kx, k1, k2, kb, kc = jax.random.split(key, 5)

    x = jax.random.normal(kx, (B, L, D), dtype=jnp.float32)

    # Deterministic parameter init (shapes follow nn.Linear in the module).
    scale = 1.0 / jnp.sqrt(jnp.float32(D))
    w1 = jax.random.uniform(k1, (D, D), jnp.float32, -scale, scale)   # Linear(D, D, bias=False)
    w2 = jax.random.uniform(k2, (D, D), jnp.float32, -scale, scale)   # Linear(D, D, bias=True)
    b2 = jax.random.uniform(kb, (D,), jnp.float32, -scale, scale)     # bias of weight2
    wc = jax.random.uniform(kc, (1, D), jnp.float32, -scale, scale)   # Linear(D, 1, bias=False)

    ref = reference_forward(x, w1, w2, b2, wc)

    # Exact-precision path (f32 stream + f32 MXU operands): tight correctness check.
    out_f32 = jax.block_until_ready(
        soft_attn_forward(x, w1, w2, b2, wc, matmul_dtype=jnp.float32))
    assert out_f32.shape == (B, D)
    assert jnp.allclose(out_f32, ref, atol=1e-4, rtol=1e-4)

    # Default perf path (bf16 stream/MXU operands, f32 elementwise): looser
    # tolerance (exactness is already proven by the f32 path above).
    out_bf16 = jax.block_until_ready(soft_attn_forward(x, w1, w2, b2, wc))
    assert out_bf16.shape == (B, D)
    assert jnp.allclose(out_bf16, ref, atol=5e-2, rtol=5e-2)

    print("KERNEL_OK")
</pallas_src>

<mosaic_0001>
module attributes {stable_mosaic.version = 11 : i64} {
  func.func @soft_attn_kernel(%arg0: i32, %arg1: memref<8x8x128xf32, #tpu.memory_space<vmem>>, %arg2: memref<128x128xf32, #tpu.memory_space<vmem>>, %arg3: memref<128x128xf32, #tpu.memory_space<vmem>>, %arg4: memref<1x128xf32, #tpu.memory_space<vmem>>, %arg5: memref<1x128xf32, #tpu.memory_space<vmem>>, %arg6: memref<8x128xf32, #tpu.memory_space<vmem>>) attributes {dimension_semantics = [#tpu.dimension_semantics<parallel>], iteration_bounds = array<i64: 1>, scalar_prefetch = 0 : i64, scratch_operands = 0 : i64, tpu.core_type = #tpu.core_type<tc>, window_params = [{transform_indices = @transform_0, window_bounds = array<i64: 8, 8, 128>}, {pipeline_mode = #tpu.pipeline_mode<synchronous>, transform_indices = @transform_1, window_bounds = array<i64: 128, 128>}, {pipeline_mode = #tpu.pipeline_mode<synchronous>, transform_indices = @transform_2, window_bounds = array<i64: 128, 128>}, {pipeline_mode = #tpu.pipeline_mode<synchronous>, transform_indices = @transform_3, window_bounds = array<i64: 1, 128>}, {pipeline_mode = #tpu.pipeline_mode<synchronous>, transform_indices = @transform_4, window_bounds = array<i64: 1, 128>}, {transform_indices = @transform_5, window_bounds = array<i64: 8, 128>}]} {
    %c0 = arith.constant 0 : index
    %c0_0 = arith.constant 0 : index
    %c0_1 = arith.constant 0 : index
    %0 = vector.load %arg1[%c0, %c0_0, %c0_1] : memref<8x8x128xf32, #tpu.memory_space<vmem>>, vector<8x8x128xf32>
    %cst = arith.constant dense<0.000000e+00> : vector<8x128xf32>
    %1 = vector.multi_reduction <add>, %0, %cst [1] : vector<8x8x128xf32> to vector<8x128xf32>
    %cst_2 = arith.constant 1.250000e-01 : f32
    %2 = vector.broadcast %cst_2 : f32 to vector<8x128xf32>
    %3 = arith.mulf %1, %2 : vector<8x128xf32>
    %c0_3 = arith.constant 0 : index
    %c0_4 = arith.constant 0 : index
    %4 = vector.load %arg2[%c0_3, %c0_4] : memref<128x128xf32, #tpu.memory_space<vmem>>, vector<128x128xf32>
    %cst_5 = arith.constant dense<0.000000e+00> : vector<8x128xf32>
    %5 = tpu.matmul %3, %4, %cst_5 {dimension_numbers = #tpu.dot_dimension_numbers<[1], [0], [0], [1], [0, 0, 1, 1], [], []>} : vector<8x128xf32>, vector<128x128xf32>, vector<8x128xf32> -> vector<8x128xf32>
    %c0_6 = arith.constant 0 : index
    %c0_7 = arith.constant 0 : index
    %6 = vector.load %arg4[%c0_6, %c0_7] : memref<1x128xf32, #tpu.memory_space<vmem>>, vector<1x128xf32>
    %7 = vector.broadcast %6 : vector<1x128xf32> to vector<8x128xf32>
    %8 = arith.addf %5, %7 : vector<8x128xf32>
    %9 = vector.shape_cast %0 : vector<8x8x128xf32> to vector<64x128xf32>
    %c0_8 = arith.constant 0 : index
    %c0_9 = arith.constant 0 : index
    %10 = vector.load %arg3[%c0_8, %c0_9] : memref<128x128xf32, #tpu.memory_space<vmem>>, vector<128x128xf32>
    %cst_10 = arith.constant dense<0.000000e+00> : vector<64x128xf32>
    %11 = tpu.matmul %9, %10, %cst_10 {dimension_numbers = #tpu.dot_dimension_numbers<[1], [0], [0], [1], [0, 0, 1, 1], [], []>} : vector<64x128xf32>, vector<128x128xf32>, vector<64x128xf32> -> vector<64x128xf32>
    %12 = vector.shape_cast %11 : vector<64x128xf32> to vector<8x8x128xf32>
    %13 = vector.shape_cast %8 : vector<8x128xf32> to vector<8x1x128xf32>
    %14 = vector.broadcast %13 : vector<8x1x128xf32> to vector<8x8x128xf32>
    %15 = arith.addf %14, %12 : vector<8x8x128xf32>
    %16 = arith.negf %15 : vector<8x8x128xf32>
    %17 = math.exp %16 : vector<8x8x128xf32>
    %cst_11 = arith.constant 1.000000e+00 : f32
    %18 = vector.broadcast %cst_11 : f32 to vector<8x8x128xf32>
    %19 = arith.addf %18, %17 : vector<8x8x128xf32>
    %20 = arith.divf %18, %19 : vector<8x8x128xf32>
    %c0_12 = arith.constant 0 : index
    %c0_13 = arith.constant 0 : index
    %21 = vector.load %arg5[%c0_12, %c0_13] : memref<1x128xf32, #tpu.memory_space<vmem>>, vector<1x128xf32>
    %22 = vector.shape_cast %21 : vector<1x128xf32> to vector<1x1x128xf32>
    %23 = vector.broadcast %22 : vector<1x1x128xf32> to vector<8x8x128xf32>
    %24 = arith.mulf %20, %23 : vector<8x8x128xf32>
    %cst_14 = arith.constant dense<0.000000e+00> : vector<8x8xf32>
    %25 = vector.multi_reduction <add>, %24, %cst_14 [2] : vector<8x8x128xf32> to vector<8x8xf32>
    %26 = vector.shape_cast %25 : vector<8x8xf32> to vector<8x8x1xf32>
    %27 = vector.broadcast %26 : vector<8x8x1xf32> to vector<8x8x128xf32>
    %28 = arith.mulf %27, %0 : vector<8x8x128xf32>
    %cst_15 = arith.constant dense<0.000000e+00> : vector<8x128xf32>
    %29 = vector.multi_reduction <add>, %28, %cst_15 [1] : vector<8x8x128xf32> to vector<8x128xf32>
    %c0_16 = arith.constant 0 : index
    %c0_17 = arith.constant 0 : index
    %30 = vector.load %arg6[%c0_16, %c0_17] : memref<8x128xf32, #tpu.memory_space<vmem>>, vector<8x128xf32>
    tpu.vector_store %arg6[%c0_16, %c0_17], %29 {strides = array<i32>} : memref<8x128xf32, #tpu.memory_space<vmem>>, vector<8x128xf32>,
    return
  }
  func.func @transform_0(%arg0: i32) -> (i32, i32, i32) {
    %c0_i32 = arith.constant 0 : i32
    %c0_i32_0 = arith.constant 0 : i32
    %c0_i32_1 = arith.constant 0 : i32
    return %arg0, %c0_i32, %c0_i32_0 : i32, i32, i32
  }
  func.func @transform_1(%arg0: i32) -> (i32, i32) {
    %c0_i32 = arith.constant 0 : i32
    %c0_i32_0 = arith.constant 0 : i32
    %c0_i32_1 = arith.constant 0 : i32
    return %c0_i32, %c0_i32_0 : i32, i32
  }
  func.func @transform_2(%arg0: i32) -> (i32, i32) {
    %c0_i32 = arith.constant 0 : i32
    %c0_i32_0 = arith.constant 0 : i32
    %c0_i32_1 = arith.constant 0 : i32
    return %c0_i32, %c0_i32_0 : i32, i32
  }
  func.func @transform_3(%arg0: i32) -> (i32, i32) {
    %c0_i32 = arith.constant 0 : i32
    %c0_i32_0 = arith.constant 0 : i32
    %c0_i32_1 = arith.constant 0 : i32
    return %c0_i32, %c0_i32_0 : i32, i32
  }
  func.func @transform_4(%arg0: i32) -> (i32, i32) {
    %c0_i32 = arith.constant 0 : i32
    %c0_i32_0 = arith.constant 0 : i32
    %c0_i32_1 = arith.constant 0 : i32
    return %c0_i32, %c0_i32_0 : i32, i32
  }
  func.func @transform_5(%arg0: i32) -> (i32, i32) {
    %c0_i32 = arith.constant 0 : i32
    %c0_i32_0 = arith.constant 0 : i32
    return %arg0, %c0_i32 : i32, i32
  }
}

</mosaic_0001>

<bundles_post_ra>
// kernel: tpu_custom_call.1
= control target key start
LH: loop header
LB: loop body
LE: loop exit
PB: predicated region body
PF: predicated region fallthrough
CT: control target
= control target key end

     0   :  { %10 = vsyncpa [#allocation3], 0  ;;  %s1163_s0 = inlined_call_operand.hbm [shape: f32[8,8,128], index: 0, kind: input, shape index: {}]   ;;  %s1164_s1 = inlined_call_operand.hbm [shape: f32[128,128], index: 1, kind: input, shape index: {}]   ;;  %s1165_s2 = inlined_call_operand.hbm [shape: f32[128,128], index: 2, kind: input, shape index: {}]   ;;  %s1166_s3 = inlined_call_operand.vmem [shape: f32[1,128], index: 3, kind: input, shape index: {}]   ;;  %s1167_s4 = inlined_call_operand.vmem [shape: f32[1,128], index: 4, kind: input, shape index: {}]   ;;  %s1168_s5 = inlined_call_operand.hbm [shape: f32[8,128], index: 5, kind: output, shape index: {}]  }
   0x1   :  { %11 = vsyncpa [#allocation6], 0 }
   0x2   :  { %12 = vsyncpa [#allocation4], 0  ;;  %s951_s18 = smov [#allocation5]   ;;  %s952_s20 = smov [#allocation2]  }
   0x3   :  { %s30_s19 = sshll.u32 %s951_s18, 4  ;;  %s18_s21 = sshll.u32 %s952_s20, 4  ;;  %s31_s19 = int_to_ptr.vmem [resolvable:$true] %s30_s19  ;;  %s991_s21 = int_to_ptr.vmem [resolvable:$true] %s18_s21 }
   0x4   :  { %s857_s24 = scalar_lea.hbm %s1164_s1, 2048 }
   0x5   :  { %p858_p0 = scmp.ne.s32.totalorder %s1164_s1, %s857_s24  ;;  %p861_p1 = scmp.lt.u32.totalorder %s857_s24, %s1164_s1 }
   0x7   :  { %p863_p2 = pnand %p861_p1, %p858_p0 }
   0x9   :  { %866 = shalt.err (!%p863_p2)
}
   0xa   :  { %s867_s29 = scalar_lea.vmem %s31_s19, 2048  ;;  %p872_p4 = scmp.lt.s32.totalorder %s31_s19, %s31_s19 }
   0xb   :  { %p868_p3 = scmp.ne.s32.totalorder %s31_s19, %s867_s29  ;;  %p873_p5 = scmp.lt.s32.totalorder %s867_s29, %s867_s29 }
   0xd   :  { %p874_p6 = por %p873_p5, %p872_p4 }
   0xf   :  { %p875_p7 = pnand %p874_p6, %p868_p3 }
  0x11   :  { %878 = shalt.err (!%p875_p7)
}
  0x12   :  { %s953_s30 = smov 128   ;;  %s954_s6 = smov 8  }
  0x13   :  { %36 = dma.hbm_to_vmem [thread:$0]  %s1164_s1, 2048, %s31_s19, [#allocation6], %s953_s30, %s953_s30, %s954_s6  }
  0x14   :  { %s879_s11 = scalar_lea.hbm %s1163_s0, 1024 }
  0x15   :  { %p880_p8 = scmp.ne.s32.totalorder %s1163_s0, %s879_s11  ;;  %p883_p9 = scmp.lt.u32.totalorder %s879_s11, %s1163_s0 }
  0x17   :  { %p885_p10 = pnand %p883_p9, %p880_p8 }
  0x19   :  { %888 = shalt.err (!%p885_p10)
}
  0x1a   :  { %s889_s16 = scalar_lea.vmem %s991_s21, 1024  ;;  %p894_p12 = scmp.lt.s32.totalorder %s991_s21, %s991_s21 }
  0x1b   :  { %p890_p11 = scmp.ne.s32.totalorder %s991_s21, %s889_s16  ;;  %p895_p13 = scmp.lt.s32.totalorder %s889_s16, %s889_s16 }
  0x1d   :  { %p896_p0 = por %p895_p13, %p894_p12 }
  0x1f   :  { %p897_p1 = pnand %p896_p0, %p890_p11 }
  0x21   :  { %900 = shalt.err (!%p897_p1)
}
  0x22   :  { %24 = dma.hbm_to_vmem [thread:$0]  %s1163_s0, 1024, %s991_s21, [#allocation3], %s953_s30, %s953_s30, %s954_s6  }
  0x23   :  { %s955_s18 = smov [#allocation7]   ;;  %s901_s23 = scalar_lea.hbm %s1165_s2, 2048 }
  0x24   :  { %s42_s19 = sshll.u32 %s955_s18, 4  ;;  %p902_p2 = scmp.ne.s32.totalorder %s1165_s2, %s901_s23  ;;  %s43_s19 = int_to_ptr.vmem [resolvable:$true] %s42_s19 }
  0x25   :  { %p905_p3 = scmp.lt.u32.totalorder %s901_s23, %s1165_s2 }
  0x27   :  { %p907_p4 = pnand %p905_p3, %p902_p2 }
  0x29   :  { %910 = shalt.err (!%p907_p4)
}
  0x2a   :  { %s911_s28 = scalar_lea.vmem %s43_s19, 2048  ;;  %p916_p6 = scmp.lt.s32.totalorder %s43_s19, %s43_s19 }
  0x2b   :  { %p912_p5 = scmp.ne.s32.totalorder %s43_s19, %s911_s28  ;;  %p917_p7 = scmp.lt.s32.totalorder %s911_s28, %s911_s28 }
  0x2d   :  { %p918_p8 = por %p917_p7, %p916_p6 }
  0x2f   :  { %p919_p9 = pnand %p918_p8, %p912_p5 }
  0x31   :  { %922 = shalt.err (!%p919_p9)
}
  0x32   :  { %48 = dma.hbm_to_vmem [thread:$0]  %s1165_s2, 2048, %s43_s19, [#allocation6], %s953_s30, %s953_s30, %s954_s6  }
  0x33   :  { %945 = dma.done.wait [#allocation3], 1024  }
  0x34   :  { %946 = vsyncadd [#allocation3], 4294966272 }
  0x35   :  { %947 = dma.done.wait [#allocation6], 4096  }
  0x36   :  { %948 = vsyncadd [#allocation6], 4294963200  ;;  %v956_v0 = vmov 0.0|0.0   ;;  %vm957_vm0 = vmmov 0   ;;  %v958_v1 = vmov 0.0   ;;  %v126_v2 = vld [vmem:[#allocation5] sm:$0xff] }
  0x37   :  { %759 = vmatprep.subr.bf16.mxu0 %v956_v0  ;;  %712 = vmatprep.mubr.msk.f32.mxu0 %vm957_vm0, %v958_v1  ;;  %v127_v3 = vld [vmem:[#allocation5 + $0x8] sm:$0xff]  ;;  %v242_v4 = vld [vmem:[#allocation7] sm:$0xff]  ;;  %v128_v7 = vld [vmem:[#allocation5 + $0x10] sm:$0xff]  ;;  %vm157_vm1 = vcmask 1041409   ;;  %vm159_vm2 = vcmask 1042434   ;;  %vm161_vm3 = vcmask 1043459  }
  0x38   :  { %v760_v5 = vpack.c.bf16 %v127_v3, %v126_v2  ;;  %v243_v6 = vld [vmem:[#allocation7 + $0x8] sm:$0xff]  ;;  %v129_v8 = vld [vmem:[#allocation5 + $0x18] sm:$0xff]  ;;  %v244_v10 = vld [vmem:[#allocation7 + $0x10] sm:$0xff]  ;;  %vm163_vm4 = vcmask 1044484   ;;  %vm165_vm5 = vcmask 1045509   ;;  %vm167_vm6 = vcmask 1046534  }
  0x39   :  { %v783_v9 = vpack.c.bf16 %v243_v6, %v242_v4  ;;  %v245_v11 = vld [vmem:[#allocation7 + $0x18] sm:$0xff]  ;;  %v763_v12 = vpack.c.bf16 %v129_v8, %v128_v7  ;;  %v246_v14 = vld [vmem:[#allocation7 + $0x20] sm:$0xff]  ;;  %v247_v15 = vld [vmem:[#allocation7 + $0x28] sm:$0xff]  ;;  %vm169_vm7 = vcmask 1047559  }
  0x3a   :  { %761 = vmatpush3.bf16.msra.mxu0 %v760_v5  ;;  %v787_v13 = vpack.c.bf16 %v245_v11, %v244_v10  ;;  %v130_v16 = vld [vmem:[#allocation5 + $0x20] sm:$0xff]  ;;  %v131_v17 = vld [vmem:[#allocation5 + $0x28] sm:$0xff]  ;;  %v132_v18 = vld [vmem:[#allocation5 + $0x30] sm:$0xff]  ;;  %v791_v23 = vpack.c.bf16 %v247_v15, %v246_v14 }
  0x3b   :  { %784 = vmatprep.subr.bf16.mxu1 %v783_v9  ;;  %762 = vmatprep.subr.bf16.mxu0 %v956_v0  ;;  %v133_v19 = vld [vmem:[#allocation5 + $0x38] sm:$0xff]  ;;  %v248_v20 = vld [vmem:[#allocation7 + $0x30] sm:$0xff]  ;;  %v1045_v22 = vld [vmem:[#allocation5 + $0x40] sm:$0xff]  ;;  %v766_v27 = vpack.c.bf16 %v131_v17, %v130_v16 }
  0x3c   :  { %786 = vmatpush3.bf16.msra.mxu1 %v783_v9  ;;  %v249_v21 = vld [vmem:[#allocation7 + $0x38] sm:$0xff]  ;;  %v1047_v24 = vld [vmem:[#allocation5 + $0x48] sm:$0xff]  ;;  %v250_v25 = vld [vmem:[#allocation7 + $0x40] sm:$0xff]  ;;  %v769_v36 = vpack.c.bf16 %v133_v19, %v132_v18 }
  0x3d   :  { %788 = vmatprep.subr.bf16.mxu1 %v787_v13  ;;  %v251_v26 = vld [vmem:[#allocation7 + $0x48] sm:$0xff]  ;;  %v1049_v28 = vld [vmem:[#allocation5 + $0x50] sm:$0xff]  ;;  %v1051_v29 = vld [vmem:[#allocation5 + $0x58] sm:$0xff]  ;;  %v795_v37 = vpack.c.bf16 %v249_v21, %v248_v20  ;;  %v772_v38 = vpack.c.bf16 %v1047_v24, %v1045_v22 }
  0x3e   :  { %764 = vmatpush3.bf16.msra.mxu0 %v763_v12  ;;  %v252_v30 = vld [vmem:[#allocation7 + $0x50] sm:$0xff]  ;;  %v253_v31 = vld [vmem:[#allocation7 + $0x58] sm:$0xff]  ;;  %v1054_v32 = vld [vmem:[#allocation5 + $0x60] sm:$0xff]  ;;  %v799_v39 = vpack.c.bf16 %v251_v26, %v250_v25  ;;  %v775_v41 = vpack.c.bf16 %v1051_v29, %v1049_v28 }
  0x3f   :  { %765 = vmatprep.subr.bf16.mxu0 %v956_v0  ;;  %v1056_v33 = vld [vmem:[#allocation5 + $0x68] sm:$0xff]  ;;  %v254_v34 = vld [vmem:[#allocation7 + $0x60] sm:$0xff]  ;;  %v1064_v42 = vpack.c.bf16 %v253_v31, %v252_v30  ;;  %v1070_v45 = vld [vmem:[#allocation2 + $0x10] sm:$0xff] }
  0x40   :  { %790 = vmatpush3.bf16.msra.mxu1 %v787_v13  ;;  %v255_v35 = vld [vmem:[#allocation7 + $0x68] sm:$0xff]  ;;  %v1060_v40 = vld [vmem:[#allocation2] sm:$0xff]  ;;  %v778_v43 = vpack.c.bf16 %v1056_v33, %v1054_v32  ;;  %v1072_v46 = vld [vmem:[#allocation2 + $0x18] sm:$0xff]  ;;  %v82_v53 = vrot.slane %v1070_v45, 4 }
  0x41   :  { %792 = vmatprep.subr.bf16.mxu1 %v791_v23  ;;  %v1068_v44 = vld [vmem:[#allocation2 + $0x8] sm:$0xff]  ;;  %v70_v47 = vrot.slane %v1060_v40, 4  ;;  %747 = vmatprep.mubr.f32.mxu1 %v1060_v40  ;;  %v1077_v48 = vpack.c.bf16 %v255_v35, %v254_v34  ;;  %v1079_v49 = vld [vmem:[#allocation2 + $0x20] sm:$0xff]  ;;  %v1083_v51 = vld [vmem:[#allocation2 + $0x30] sm:$0xff]  ;;  %v88_v54 = vrot.slane %v1072_v46, 4 }
  0x42   :  { %767 = vmatpush3.bf16.msra.mxu0 %v766_v27  ;;  %v1081_v50 = vld [vmem:[#allocation2 + $0x28] sm:$0xff]  ;;  %v76_v52 = vrot.slane %v1068_v44, 4  ;;  %v1088_v55 = vld [vmem:[#allocation2 + $0x38] sm:$0xff]  ;;  %v94_v57 = vrot.slane %v1079_v49, 4  ;;  %v106_v59 = vrot.slane %v1083_v51, 4  ;;  %v83_v61 = vadd.f32 %v82_v53, %v1070_v45 }
  0x43   :  { %768 = vmatprep.subr.bf16.mxu0 %v956_v0  ;;  %v71_v56 = vadd.f32 %v70_v47, %v1060_v40  ;;  %v100_v58 = vrot.slane %v1081_v50, 4  ;;  %v89_v62 = vadd.f32 %v88_v54, %v1072_v46  ;;  %v112_v63 = vrot.slane %v1088_v55, 4  ;;  %v140_v54 = vld [vmem:[#allocation5 + $0x70] sm:$0xff] }
  0x44   :  { %794 = vmatpush3.bf16.msra.mxu1 %v791_v23  ;;  %v77_v60 = vadd.f32 %v76_v52, %v1068_v44  ;;  %v95_v2 = vadd.f32 %v94_v57, %v1079_v49  ;;  %v107_v4 = vadd.f32 %v106_v59, %v1083_v51  ;;  %v84_v6 = vrot.slane %v83_v61, 2 }
  0x45   :  { %796 = vmatprep.subr.bf16.mxu1 %v795_v37  ;;  %v72_v1 = vrot.slane %v71_v56, 2  ;;  %v101_v3 = vadd.f32 %v100_v58, %v1081_v50  ;;  %v90_v7 = vrot.slane %v89_v62, 2  ;;  %v113_v8 = vadd.f32 %v112_v63, %v1088_v55 }
  0x46   :  { %770 = vmatpush3.bf16.msra.mxu0 %v769_v36  ;;  %v78_v5 = vrot.slane %v77_v60, 2  ;;  %v96_v10 = vrot.slane %v95_v2, 2  ;;  %v108_v12 = vrot.slane %v107_v4, 2  ;;  %v85_v14 = vadd.f32 %v84_v6, %v83_v61 }
  0x47   :  { %771 = vmatprep.subr.bf16.mxu0 %v956_v0  ;;  %v73_v9 = vadd.f32 %v72_v1, %v71_v56  ;;  %v102_v11 = vrot.slane %v101_v3, 2  ;;  %v91_v15 = vadd.f32 %v90_v7, %v89_v62  ;;  %v114_v16 = vrot.slane %v113_v8, 2  ;;  %v141_v56 = vld [vmem:[#allocation5 + $0x78] sm:$0xff]  ;;  %v629_v7 = vld [vmem:[%s1166_s3] ss:$0 sm:$0xff] }
  0x48   :  { %798 = vmatpush3.bf16.msra.mxu1 %v795_v37  ;;  %v79_v13 = vadd.f32 %v78_v5, %v77_v60  ;;  %v97_v18 = vadd.f32 %v96_v10, %v95_v2  ;;  %v109_v20 = vadd.f32 %v108_v12, %v107_v4  ;;  %v86_v22 = vrot.slane %v85_v14, 1  ;;  %v256_v37 = vld [vmem:[#allocation7 + $0x70] sm:$0xff] }
  0x49   :  { %800 = vmatprep.subr.bf16.mxu1 %v799_v39  ;;  %v74_v17 = vrot.slane %v73_v9, 1  ;;  %v103_v19 = vadd.f32 %v102_v11, %v101_v3  ;;  %v92_v23 = vrot.slane %v91_v15, 1  ;;  %v115_v24 = vadd.f32 %v114_v16, %v113_v8 }
  0x4a   :  { %773 = vmatpush3.bf16.msra.mxu0 %v772_v38  ;;  %v80_v21 = vrot.slane %v79_v13, 1  ;;  %v98_v26 = vrot.slane %v97_v18, 1  ;;  %v110_v30 = vrot.slane %v109_v20, 1  ;;  %v87_v34 = vadd.f32 %v86_v22, %v85_v14  ;;  %v257_v38 = vld [vmem:[#allocation7 + $0x78] sm:$0xff] }
  0x4b   :  { %774 = vmatprep.subr.bf16.mxu0 %v956_v0  ;;  %v75_v25 = vadd.f32 %v74_v17, %v73_v9  ;;  %v104_v27 = vrot.slane %v103_v19, 1  ;;  %v93_v35 = vadd.f32 %v92_v23, %v91_v15  ;;  %v116_v36 = vrot.slane %v115_v24, 1 }
  0x4c   :  { %802 = vmatpush3.bf16.msra.mxu1 %v799_v39  ;;  %v81_v31 = vadd.f32 %v80_v21, %v79_v13  ;;  %v99_v47 = vadd.f32 %v98_v26, %v97_v18  ;;  %v111_v53 = vadd.f32 %v110_v30, %v109_v20  ;;  %v120_v59 = vmul.f32 0.125, %v87_v34 }
  0x4d   :  { %804 = vmatprep.subr.bf16.mxu1 %v1064_v42  ;;  %v105_v52 = vadd.f32 %v104_v27, %v103_v19  ;;  %v118_v39 = vmul.f32 0.125, %v75_v25  ;;  %v117_v57 = vadd.f32 %v116_v36, %v115_v24  ;;  %v121_v60 = vmul.f32 0.125, %v93_v35 }
  0x4e   :  { %776 = vmatpush3.bf16.msra.mxu0 %v775_v41  ;;  %v119_v58 = vmul.f32 0.125, %v81_v31  ;;  %v122_v61 = vmul.f32 0.125, %v99_v47  ;;  %v811_v28 = vpack.c.bf16 %v257_v38, %v256_v37  ;;  %v781_v62 = vpack.c.bf16 %v141_v56, %v140_v54 }
  0x4f   :  { %777 = vmatprep.subr.bf16.mxu0 %v956_v0  ;;  %v123_v29 = vmul.f32 0.125, %v105_v52  ;;  %v124_v63 = vmul.f32 0.125, %v111_v53  ;;  %v368_v4 = vlaneseq }
  0x50   :  { %806 = vmatpush3.bf16.msra.mxu1 %v1064_v42  ;;  %v158_v41 = vsel %vm157_vm1, %v119_v58, %v118_v39  ;;  %v125_v42 = vmul.f32 0.125, %v117_v57 }
  0x51   :  { %808 = vmatprep.subr.bf16.mxu1 %v1077_v48  ;;  %v160_v1 = vsel %vm159_vm2, %v120_v59, %v158_v41  ;;  %v369_v6 = vshrl.u32 %v368_v4, 7 }
  0x52   :  { %779 = vmatpush3.bf16.msra.mxu0 %v778_v43  ;;  %v162_v2 = vsel %vm161_vm3, %v121_v60, %v160_v1 }
  0x53   :  { %780 = vmatprep.subr.bf16.mxu0 %v956_v0  ;;  %v164_v3 = vsel %vm163_vm4, %v122_v61, %v162_v2  ;;  %v959_v0 = vmov 1966171168   ;;  %v415_v15 = vsub.s32 0, %v369_v6 }
  0x54   :  { %810 = vmatpush3.bf16.msra.mxu1 %v1077_v48  ;;  %v166_v32 = vsel %vm165_vm5, %v123_v29, %v164_v3  ;;  %v366_v48 = vunpack.c.l.s4 %v959_v0 }
  0x55   :  { %812 = vmatprep.subr.bf16.mxu1 %v811_v28  ;;  %v168_v33 = vsel %vm167_vm6, %v124_v63, %v166_v32 }
  0x56   :  { %782 = vmatpush3.bf16.msra.mxu0 %v781_v62  ;;  %v170_v43 = vsel %vm169_vm7, %v125_v42, %v168_v33  ;;  %v367_v5 = vunpack.c.0.s8 %v366_v48 }
  0x58   :  { %814 = vmatpush3.bf16.msra.mxu1 %v811_v28  ;;  %v370_v8 = vsub.s32 %v367_v5, %v369_v6 }
  0x59   :  { %713 = vmatmul.mubr.f32.vlgmr.msra.gmra.mrb[0].mxu0 %v170_v43 }
  0x5b   :  { %748 = vmatmul.mubr.f32.vlgmr.msra.gmra.mrb[0].mxu1 %v1068_v44 }
  0x5c   :  { %750 = vmatprep.mubr.f32.mxu1 %v1070_v45 }
  0x5f   :  { %751 = vmatmul.mubr.f32.gmra.mrb[2].mxu1 %v1072_v46 }
  0x60   :  { %753 = vmatprep.mubr.f32.mxu1 %v1079_v49 }
  0x63   :  { %754 = vmatmul.mubr.f32.gmra.mrb[4].mxu1 %v1081_v50 }
  0x64   :  { %756 = vmatprep.mubr.f32.mxu1 %v1083_v51 }
  0x67   :  { %757 = vmatmul.mubr.f32.gmra.mrb[6].mxu1 %v1088_v55 }
 0x12c   :  { %v238_v9 = vpop.f32.mrb[0].mxu0 }
 0x12d   :  { %v239_v10 = vadd.f32 %v629_v7, %v238_v9  ;;  %v714_v11 = vpop.f32.mrb[1].mxu0 }
 0x12e   :  { %v749_v12 = vpop.f32.mrb[0].mxu1 }
 0x12f   :  { %v364_v13 = vcombine.high %v239_v10, %v239_v10  ;;  %v371_v14 = vrot.slane %v239_v10, %v370_v8  ;;  %v324_v16 = vpop.f32.mrb[1].mxu1 }
 0x131   :  { %v378_v17 = vrot.slane %v364_v13, %v370_v8  ;;  %v379_v18 = vcombine.high %v371_v14, %v371_v14  ;;  %v387_v19 = vrot.slane %v371_v14, %v370_v8 }
 0x132   :  { %v752_v20 = vpop.f32.mrb[2].mxu1 }
 0x133   :  { %v401_v21 = vrot.slane %v379_v18, %v370_v8  ;;  %v416_v22 = vrot.slane %v387_v19, %v415_v15  ;;  %v334_v23 = vpop.f32.mrb[3].mxu1  ;;  %v409_v24 = vcombine.high %v387_v19, %v387_v19  ;;  %v380_v25 = vcombine.high %v378_v17, %v378_v17 }
 0x134   :  { %v394_v26 = vrot.slane %v378_v17, %v370_v8  ;;  %v638_v17 = vld [vmem:[%s1167_s4] ss:$0 sm:$0xff]  ;;  %s960_s4 = smov [#allocation8]  }
 0x135   :  { %v420_v27 = vrot.slane %v401_v21, %v415_v15  ;;  %v453_v30 = vadd.f32 %v416_v22, %v324_v16  ;;  %v411_v31 = vcombine.high %v401_v21, %v401_v21  ;;  %v424_v34 = vrot.slane %v409_v24, %v415_v15  ;;  %s619_s6 = sshll.u32 %s960_s4, 4  ;;  %s620_s6 = int_to_ptr.vmem [resolvable:$true] %s619_s6 }
 0x136   :  { %v755_v35 = vpop.f32.mrb[4].mxu1  ;;  %v408_v36 = vrot.slane %v380_v25, %v370_v8  ;;  %v432_v37 = vrot.slane %v394_v26, %v415_v15  ;;  %v410_v38 = vcombine.high %v394_v26, %v394_v26  ;;  %s923_s7 = scalar_lea.vmem %s620_s6, 128  ;;  %p928_p11 = scmp.lt.s32.totalorder %s620_s6, %s620_s6 }
 0x137   :  { %v454_v47 = vadd.f32 %v749_v12, %v420_v27  ;;  %v630_v52 = vmul.f32 -1.442695, %v453_v30  ;;  %v428_v53 = vrot.slane %v411_v31, %v415_v15  ;;  %v455_v39 = vadd.f32 %v424_v34, %v334_v23  ;;  %v344_v54 = vpop.f32.mrb[5].mxu1  ;;  %p924_p10 = scmp.ne.s32.totalorder %s620_s6, %s923_s7  ;;  %p929_p12 = scmp.lt.s32.totalorder %s923_s7, %s923_s7 }
 0x138   :  { %v436_v56 = vrot.slane %v408_v36, %v415_v15  ;;  %v457_v57 = vadd.f32 %v432_v37, %v344_v54  ;;  %v412_v58 = vcombine.high %v408_v36, %v408_v36  ;;  %v440_v62 = vrot.slane %v410_v38, %v415_v15 }
 0x139   :  { %v631_v59 = vmul.f32 -1.442695, %v454_v47  ;;  %825 = vpow2.f32 %v630_v52  ;;  %v456_v60 = vadd.f32 %v752_v20, %v428_v53  ;;  %v632_v61 = vmul.f32 -1.442695, %v455_v39  ;;  %p930_p13 = por %p929_p12, %p928_p11 }
 0x13a   :  { %v458_v28 = vadd.f32 %v755_v35, %v436_v56  ;;  %v758_v29 = vpop.f32.mrb[6].mxu1  ;;  %v444_v41 = vrot.slane %v412_v58, %v415_v15  ;;  %v634_v1 = vmul.f32 -1.442695, %v457_v57 }
 0x13b   :  { %827 = vpow2.f32 %v631_v59  ;;  %v633_v63 = vmul.f32 -1.442695, %v456_v60  ;;  %v354_v42 = vpop.f32.mrb[7].mxu1  ;;  %p931_p0 = pnand %p930_p13, %p924_p10 }
 0x13c   :  { %829 = vpow2.f32 %v632_v61  ;;  %v635_v2 = vmul.f32 -1.442695, %v458_v28  ;;  %v460_v3 = vadd.f32 %v758_v29, %v444_v41  ;;  %v459_v32 = vadd.f32 %v440_v62, %v354_v42 }
 0x13d   :  { %831 = vpow2.f32 %v633_v63 }
 0x13e   :  { %833 = vpow2.f32 %v635_v2  ;;  %v637_v33 = vmul.f32 -1.442695, %v460_v3  ;;  %v636_v43 = vmul.f32 -1.442695, %v459_v32 }
 0x13f   :  { %835 = vpow2.f32 %v634_v1 }
 0x140   :  { %837 = vpow2.f32 %v636_v43 }
 0x141   :  { %839 = vpow2.f32 %v637_v33 }
 0x143   :  { %v826_v0 = vpop.eup %825 }
 0x144   :  { %v485_v48 = vadd.f32 1.0, %v826_v0 }
 0x145   :  { %v828_v4 = vpop.eup %827 }
 0x146   :  { %v830_v5 = vpop.eup %829  ;;  %v486_v6 = vadd.f32 1.0, %v828_v4  ;;  %841 = vrcp.f32 %v485_v48 }
 0x147   :  { %v832_v7 = vpop.eup %831  ;;  %v487_v8 = vadd.f32 1.0, %v830_v5 }
 0x148   :  { %v834_v9 = vpop.eup %833  ;;  %843 = vrcp.f32 %v486_v6  ;;  %v488_v10 = vadd.f32 1.0, %v832_v7 }
 0x149   :  { %v836_v11 = vpop.eup %835  ;;  %845 = vrcp.f32 %v487_v8  ;;  %v490_v14 = vadd.f32 1.0, %v834_v9 }
 0x14a   :  { %v489_v12 = vadd.f32 1.0, %v836_v11  ;;  %v838_v13 = vpop.eup %837  ;;  %847 = vrcp.f32 %v488_v10 }
 0x14b   :  { %v840_v15 = vpop.eup %839  ;;  %v491_v16 = vadd.f32 1.0, %v838_v13 }
 0x14c   :  { %849 = vrcp.f32 %v489_v12  ;;  %v492_v18 = vadd.f32 1.0, %v840_v15 }
 0x14d   :  { %851 = vrcp.f32 %v490_v14 }
 0x14e   :  { %853 = vrcp.f32 %v491_v16 }
 0x14f   :  { %855 = vrcp.f32 %v492_v18 }
 0x150   :  { %v842_v19 = vpop.eup %841 }
 0x151   :  { %v516_v20 = vmul.f32 %v842_v19, %v638_v17 }
 0x152   :  { %v844_v21 = vpop.eup %843 }
 0x153   :  { %v846_v22 = vpop.eup %845  ;;  %524 = vadd.xlane.f32.xlu0 %v516_v20  ;;  %v517_v25 = vmul.f32 %v844_v21, %v638_v17 }
 0x154   :  { %v518_v23 = vmul.f32 %v846_v22, %v638_v17  ;;  %v848_v24 = vpop.eup %847 }
 0x155   :  { %v519_v27 = vmul.f32 %v848_v24, %v638_v17 }
 0x156   :  { %v850_v26 = vpop.eup %849  ;;  %528 = vadd.xlane.f32.xlu1 %v518_v23 }
 0x157   :  { %526 = vadd.xlane.f32.xlu0 %v517_v25  ;;  %v852_v30 = vpop.eup %851  ;;  %v520_v31 = vmul.f32 %v850_v26, %v638_v17 }
 0x158   :  { %v854_v34 = vpop.eup %853  ;;  %v521_v35 = vmul.f32 %v852_v30, %v638_v17 }
 0x159   :  { %v856_v36 = vpop.eup %855  ;;  %v522_v37 = vmul.f32 %v854_v34, %v638_v17 }
 0x15a   :  { %530 = vadd.xlane.f32.xlu1 %v519_v27  ;;  %v523_v38 = vmul.f32 %v856_v36, %v638_v17 }
 0x15b   :  { %532 = vadd.xlane.f32.xlu0 %v520_v31 }
 0x15e   :  { %534 = vadd.xlane.f32.xlu1 %v521_v35 }
 0x15f   :  { %536 = vadd.xlane.f32.xlu0 %v522_v37 }
 0x162   :  { %538 = vadd.xlane.f32.xlu1 %v523_v38 }
 0x1e0   :  { %v525_v47 = vpop.xlane.xlu0 %524 }
 0x1e1   :  { %v540_v52 = vmul.f32 %v525_v47, %v1060_v40 }
 0x1e3   :  { %v548_v53 = vrot.slane %v540_v52, 4  ;;  %v529_v39 = vpop.xlane.xlu1 %528 }
 0x1e4   :  { %v542_v54 = vmul.f32 %v529_v39, %v1070_v45  ;;  %v527_v56 = vpop.xlane.xlu0 %526 }
 0x1e5   :  { %v549_v57 = vadd.f32 %v548_v53, %v540_v52  ;;  %v541_v58 = vmul.f32 %v527_v56, %v1068_v44 }
 0x1e6   :  { %v560_v59 = vrot.slane %v542_v54, 4 }
 0x1e7   :  { %v550_v60 = vrot.slane %v549_v57, 2  ;;  %v554_v61 = vrot.slane %v541_v58, 4  ;;  %v531_v28 = vpop.xlane.xlu1 %530 }
 0x1e8   :  { %v561_v29 = vadd.f32 %v560_v59, %v542_v54  ;;  %v543_v41 = vmul.f32 %v531_v28, %v1072_v46  ;;  %v533_v62 = vpop.xlane.xlu0 %532 }
 0x1e9   :  { %v551_v63 = vadd.f32 %v550_v60, %v549_v57  ;;  %v555_v1 = vadd.f32 %v554_v61, %v541_v58  ;;  %v544_v40 = vmul.f32 %v533_v62, %v1079_v49 }
 0x1ea   :  { %v562_v42 = vrot.slane %v561_v29, 2  ;;  %v566_v2 = vrot.slane %v543_v41, 4 }
 0x1eb   :  { %v556_v3 = vrot.slane %v555_v1, 2  ;;  %v572_v45 = vrot.slane %v544_v40, 4  ;;  %v535_v32 = vpop.xlane.xlu1 %534  ;;  %v552_v48 = vrot.slane %v551_v63, 1 }
 0x1ec   :  { %v563_v33 = vadd.f32 %v562_v42, %v561_v29  ;;  %v567_v43 = vadd.f32 %v566_v2, %v543_v41  ;;  %v545_v44 = vmul.f32 %v535_v32, %v1081_v50  ;;  %v537_v0 = vpop.xlane.xlu0 %536 }
 0x1ed   :  { %v557_v4 = vadd.f32 %v556_v3, %v555_v1  ;;  %v573_v5 = vadd.f32 %v572_v45, %v544_v40  ;;  %v546_v46 = vmul.f32 %v537_v0, %v1083_v51  ;;  %v553_v15 = vadd.f32 %v552_v48, %v551_v63 }
 0x1ee   :  { %v564_v6 = vrot.slane %v563_v33, 1  ;;  %v568_v7 = vrot.slane %v567_v43, 2  ;;  %v578_v8 = vrot.slane %v545_v44, 4 }
 0x1ef   :  { %v558_v9 = vrot.slane %v557_v4, 1  ;;  %v574_v49 = vrot.slane %v573_v5, 2  ;;  %v584_v10 = vrot.slane %v546_v46, 4  ;;  %v539_v11 = vpop.xlane.xlu1 %538 }
 0x1f0   :  { %v569_v12 = vadd.f32 %v568_v7, %v567_v43  ;;  %v579_v13 = vadd.f32 %v578_v8, %v545_v44  ;;  %v547_v14 = vmul.f32 %v539_v11, %v1088_v55  ;;  %v565_v18 = vadd.f32 %v564_v6, %v563_v33 }
 0x1f1   :  { %v559_v16 = vadd.f32 %v558_v9, %v557_v4  ;;  %v575_v50 = vadd.f32 %v574_v49, %v573_v5  ;;  %v585_v17 = vadd.f32 %v584_v10, %v546_v46 }
 0x1f2   :  { %v570_v19 = vrot.slane %v569_v12, 1  ;;  %v580_v20 = vrot.slane %v579_v13, 2  ;;  %v590_v21 = vrot.slane %v547_v14, 4 }
 0x1f3   :  { %v604_v51 = vsel %vm157_vm1, %v559_v16, %v553_v15  ;;  %v576_v22 = vrot.slane %v575_v50, 1  ;;  %v586_v23 = vrot.slane %v585_v17, 2 }
 0x1f4   :  { %v605_v24 = vsel %vm159_vm2, %v565_v18, %v604_v51  ;;  %v571_v25 = vadd.f32 %v570_v19, %v569_v12  ;;  %v581_v26 = vadd.f32 %v580_v20, %v579_v13  ;;  %v591_v27 = vadd.f32 %v590_v21, %v547_v14 }
 0x1f5   :  { %v577_v30 = vadd.f32 %v576_v22, %v575_v50  ;;  %v587_v31 = vadd.f32 %v586_v23, %v585_v17 }
 0x1f6   :  { %v606_v55 = vsel %vm161_vm3, %v571_v25, %v605_v24  ;;  %v582_v34 = vrot.slane %v581_v26, 1  ;;  %v592_v35 = vrot.slane %v591_v27, 2 }
 0x1f7   :  { %v588_v36 = vrot.slane %v587_v31, 1  ;;  %v607_v37 = vsel %vm163_vm4, %v577_v30, %v606_v55 }
 0x1f8   :  { %v583_v38 = vadd.f32 %v582_v34, %v581_v26  ;;  %v593_v47 = vadd.f32 %v592_v35, %v591_v27 }
 0x1f9   :  { %v589_v52 = vadd.f32 %v588_v36, %v587_v31 }
 0x1fa   :  { %v594_v53 = vrot.slane %v593_v47, 1  ;;  %v608_v39 = vsel %vm165_vm5, %v583_v38, %v607_v37 }
 0x1fb   :  { %v609_v54 = vsel %vm167_vm6, %v589_v52, %v608_v39 }
 0x1fc   :  { %v595_v56 = vadd.f32 %v594_v53, %v593_v47 }
 0x1fe   :  { %v610_v57 = vsel %vm169_vm7, %v595_v56, %v609_v54 }
 0x1ff   :  { %612 = vst [vmem:[#allocation8] sm:$0xff] %v610_v57 }
 0x200   :  { %934 = shalt.err (!%p931_p0)
}
 0x201   :  { %s935_s10 = scalar_lea.hbm %s1168_s5, 128 }
 0x202   :  { %p936_p1 = scmp.ne.s32.totalorder %s1168_s5, %s935_s10  ;;  %p939_p2 = scmp.lt.u32.totalorder %s935_s10, %s1168_s5 }
 0x204   :  { %p941_p3 = pnand %p939_p2, %p936_p1 }
 0x206   :  { %944 = shalt.err (!%p941_p3)
}
 0x207   :  { %622 = dma.vmem_to_hbm [thread:$0]  %s620_s6, 128, %s1168_s5, [#allocation4]  }
 0x208   :  { %949 = dma.done.wait [#allocation4], 128  }
 0x209   :  { %950 = vsyncadd [#allocation4], 4294967168 }
 0x20a   :  { %626 = vsyncpa [#allocation3], 1 }
 0x20b   :  { %627 = vsyncpa [#allocation6], 1 }
 0x20c   :  { %628 = vsyncpa [#allocation4], 1 }

</bundles_post_ra>
